<compile_context>
chip_gen: v7x
topology: tpu7x:2x2x1
jax: 0.10.0
libtpu: 0.0.40
codegen_flags: <defaults>
</compile_context>

<pallas_src>
import jax
import jax.numpy as jnp
import numpy as np
from jax.experimental import pallas as pl
from jax.experimental.pallas import tpu as pltpu


def _round_up(x, m):
    return ((x + m - 1) // m) * m


def bernoulli_mixture_kernel(x_ref, p_dk_ref, bias_ref, out_ref):
    """One batch tile.

    x_ref    : (TB, D)   data tile (f32 or bf16; x is binary so bf16 is exact)
    p_dk_ref : (D, K)    Bernoulli logits, pre-transposed (grid-invariant)
    bias_ref : (1, K)    log_softmax(logits_w) - sum_d softplus(logits_p), f32
    out_ref  : (TB, 1)   per-row log-prob
    """
    # Cross term on the MXU; contraction over D, f32 accumulation.
    s = jnp.dot(x_ref[...], p_dk_ref[...],
                preferred_element_type=jnp.float32)                 # (TB, K)

    # Component log-probs + log mixture weights (grid-invariant bias).
    lg = s + bias_ref[...]                                          # (TB, K)

    # Numerically stable logsumexp over the mixture axis K (lane axis), f32.
    m = jnp.max(lg, axis=-1, keepdims=True)                         # (TB, 1)
    lse = m + jnp.log(jnp.sum(jnp.exp(lg - m), axis=-1, keepdims=True))

    # Direct (TB, 1) store — output bytes are negligible, no relayout needed.
    out_ref[...] = lse


def bernoulli_mixture_forward(x, logits_p, logits_w, *, tb=512,
                              mxu_dtype=jnp.float32):
    """log p(x) under a Bernoulli mixture.  x: (B, D) -> (B,) float32."""
    B, D = x.shape
    K, Dp = logits_p.shape
    assert D == Dp and logits_w.shape == (K,)

    logits_p32 = logits_p.astype(jnp.float32)

    # ---- Grid-invariant precompute, hoisted out of the kernel (O(K*D) once).
    log_w = jax.nn.log_softmax(logits_w.astype(jnp.float32), axis=0)  # (K,)
    norm = jnp.sum(jax.nn.softplus(logits_p32), axis=-1)              # (K,)
    bias = (log_w - norm).reshape(1, K)                               # (1, K)

    # Pre-transpose parameters once so the kernel matmul is (TB,D) @ (D,K).
    p_dk = logits_p32.T                                               # (D, K)

    # Pad K to a lane-dense multiple of 128; padded components get zero logits
    # and bias = -1e30 so they contribute exp(..) = 0 to the logsumexp.
    k_pad = _round_up(K, 128)
    if k_pad != K:
        p_dk = jnp.pad(p_dk, ((0, 0), (0, k_pad - K)))
        bias = jnp.pad(bias, ((0, 0), (0, k_pad - K)), constant_values=-1e30)

    # MXU input dtype (bf16 recommended on v6e/v7x; accumulation stays f32).
    x = x.astype(mxu_dtype)
    p_dk = p_dk.astype(mxu_dtype)

    # ---- Batch tiling: large MXU-aligned tile, pad the tail, and keep >= 2
    # "parallel" grid steps when B allows it (v7x has 2 TensorCores).
    tb_eff = min(tb, _round_up(B, 8))
    if B > 8 and _round_up(B, tb_eff) // tb_eff < 2:
        tb_eff = max(8, _round_up((B + 1) // 2, 8))
    b_pad = _round_up(B, tb_eff)
    if b_pad != B:
        x = jnp.pad(x, ((0, b_pad - B), (0, 0)))   # padded rows sliced off below
    grid_b = b_pad // tb_eff

    # ---- VMEM budget: x tile x2 (double-buffered) + params x1 (Buffered(1))
    # + bias + output, with headroom.  v5e's scoped default is only 16 MiB.
    itemsize = jnp.dtype(mxu_dtype).itemsize
    est = (2 * tb_eff * D * itemsize        # x tile, double-buffered
           + D * k_pad * itemsize           # (D, K) params, single-buffered
           + 8 * k_pad * 4                  # bias (padded to 8 sublanes)
           + 2 * tb_eff * 4)                # output tile
    vmem_limit = int(min(max(2 * est + (1 << 20), 32 << 20), 64 << 20))

    out = pl.pallas_call(
        bernoulli_mixture_kernel,
        out_shape=jax.ShapeDtypeStruct((b_pad, 1), jnp.float32),
        grid_spec=pltpu.PrefetchScalarGridSpec(
            num_scalar_prefetch=0,
            grid=(grid_b,),
            in_specs=[
                # x batch tile — pipelined (double-buffered by default).
                pl.BlockSpec((tb_eff, D), lambda i: (i, 0)),
                # Grid-invariant params: single-buffer (constant index_map).
                pl.BlockSpec((D, k_pad), lambda i: (0, 0),
                             pipeline_mode=pl.Buffered(1)),
                pl.BlockSpec((1, k_pad), lambda i: (0, 0),
                             pipeline_mode=pl.Buffered(1)),
            ],
            out_specs=pl.BlockSpec((tb_eff, 1), lambda i: (i, 0)),
        ),
        compiler_params=pltpu.CompilerParams(
            dimension_semantics=("parallel",),
            vmem_limit_bytes=vmem_limit),
    )(x, p_dk, bias)

    return out.reshape(b_pad)[:B]   # drop padded rows -> (B,)


def _reference_forward(x, logits_p, logits_w):
    # Pure-JAX reference matching PyTorch semantics exactly.
    log_w = jax.nn.log_softmax(logits_w, axis=0)                       # (K,)
    lp_elem = (x[:, None, :] * logits_p[None, :, :]
               - jax.nn.softplus(logits_p)[None, :, :])                # (B, K, D)
    lp = jnp.sum(lp_elem, axis=-1)                                     # (B, K)
    return jax.scipy.special.logsumexp(lp + log_w[None, :], axis=1)    # (B,)


if __name__ == "__main__":
    key = jax.random.PRNGKey(0)
    k1, k2, k3, k4, k5 = jax.random.split(key, 5)

    B, K, D = 16, 128, 256

    # Deterministic synthetic parameters (module __init__ takes logits tensors).
    logits_p = jax.random.normal(k1, (K, D), dtype=jnp.float32)
    logits_w = jax.random.normal(k2, (K,), dtype=jnp.float32)
    # Binary input data in {0, 1}.
    x = (jax.random.uniform(k3, (B, D)) < 0.5).astype(jnp.float32)

    ref = _reference_forward(x, logits_p, logits_w)

    # Default f32 MXU path; B=16 splits into two "parallel" grid steps.
    out = jax.block_until_ready(bernoulli_mixture_forward(x, logits_p, logits_w))
    np.testing.assert_allclose(np.asarray(out), np.asarray(ref),
                               rtol=1e-4, atol=1e-3)

    # Ragged batch (B not a multiple of 8): exercises padding + tail slicing.
    xr = x[:10]
    out_r = jax.block_until_ready(
        bernoulli_mixture_forward(xr, logits_p, logits_w))
    np.testing.assert_allclose(
        np.asarray(out_r), np.asarray(_reference_forward(xr, logits_p, logits_w)),
        rtol=1e-4, atol=1e-3)

    # K not a multiple of 128: exercises lane-padding of the mixture axis.
    Kr = 100
    logits_p_r = jax.random.normal(k4, (Kr, D), dtype=jnp.float32)
    logits_w_r = jax.random.normal(k5, (Kr,), dtype=jnp.float32)
    out_k = jax.block_until_ready(
        bernoulli_mixture_forward(x, logits_p_r, logits_w_r))
    np.testing.assert_allclose(
        np.asarray(out_k),
        np.asarray(_reference_forward(x, logits_p_r, logits_w_r)),
        rtol=1e-4, atol=1e-3)

    # bf16 MXU inputs (v6e/v7x fast path): x is exact in bf16, logits_p rounds
    # at ~2^-9 relative, so validate against a looser tolerance.
    out_bf16 = jax.block_until_ready(
        bernoulli_mixture_forward(x, logits_p, logits_w,
                                  mxu_dtype=jnp.bfloat16))
    np.testing.assert_allclose(np.asarray(out_bf16), np.asarray(ref),
                               rtol=5e-3, atol=0.5)

    print("KERNEL_OK")
</pallas_src>

<mosaic_0001>
module attributes {stable_mosaic.version = 11 : i64} {
  func.func @bernoulli_mixture_kernel(%arg0: i32, %arg1: memref<8x256xf32, #tpu.memory_space<vmem>>, %arg2: memref<256x128xf32, #tpu.memory_space<vmem>>, %arg3: memref<1x128xf32, #tpu.memory_space<vmem>>, %arg4: memref<8x1xf32, #tpu.memory_space<vmem>>) attributes {dimension_semantics = [#tpu.dimension_semantics<parallel>], iteration_bounds = array<i64: 2>, scalar_prefetch = 0 : i64, scratch_operands = 0 : i64, tpu.core_type = #tpu.core_type<tc>, window_params = [{transform_indices = @transform_0, window_bounds = array<i64: 8, 256>}, {pipeline_mode = #tpu.pipeline_mode<synchronous>, transform_indices = @transform_1, window_bounds = array<i64: 256, 128>}, {pipeline_mode = #tpu.pipeline_mode<synchronous>, transform_indices = @transform_2, window_bounds = array<i64: 1, 128>}, {transform_indices = @transform_3, window_bounds = array<i64: 8, 1>}]} {
    %c0 = arith.constant 0 : index
    %c0_0 = arith.constant 0 : index
    %0 = vector.load %arg1[%c0, %c0_0] : memref<8x256xf32, #tpu.memory_space<vmem>>, vector<8x256xf32>
    %c0_1 = arith.constant 0 : index
    %c0_2 = arith.constant 0 : index
    %1 = vector.load %arg2[%c0_1, %c0_2] : memref<256x128xf32, #tpu.memory_space<vmem>>, vector<256x128xf32>
    %cst = arith.constant dense<0.000000e+00> : vector<8x128xf32>
    %2 = tpu.matmul %0, %1, %cst {dimension_numbers = #tpu.dot_dimension_numbers<[1], [0], [0], [1], [0, 0, 1, 1], [], []>} : vector<8x256xf32>, vector<256x128xf32>, vector<8x128xf32> -> vector<8x128xf32>
    %c0_3 = arith.constant 0 : index
    %c0_4 = arith.constant 0 : index
    %3 = vector.load %arg3[%c0_3, %c0_4] : memref<1x128xf32, #tpu.memory_space<vmem>>, vector<1x128xf32>
    %4 = vector.broadcast %3 : vector<1x128xf32> to vector<8x128xf32>
    %5 = arith.addf %2, %4 : vector<8x128xf32>
    %cst_5 = arith.constant dense<0xFF800000> : vector<8xf32>
    %6 = vector.multi_reduction <maximumf>, %5, %cst_5 [1] : vector<8x128xf32> to vector<8xf32>
    %7 = vector.shape_cast %6 : vector<8xf32> to vector<8x1xf32>
    %8 = vector.broadcast %7 : vector<8x1xf32> to vector<8x128xf32>
    %9 = arith.subf %5, %8 : vector<8x128xf32>
    %10 = math.exp %9 : vector<8x128xf32>
    %cst_6 = arith.constant dense<0.000000e+00> : vector<8xf32>
    %11 = vector.multi_reduction <add>, %10, %cst_6 [1] : vector<8x128xf32> to vector<8xf32>
    %12 = vector.shape_cast %11 : vector<8xf32> to vector<8x1xf32>
    %13 = math.log %12 : vector<8x1xf32>
    %14 = arith.addf %7, %13 : vector<8x1xf32>
    %c0_7 = arith.constant 0 : index
    %c0_8 = arith.constant 0 : index
    %15 = vector.load %arg4[%c0_7, %c0_8] : memref<8x1xf32, #tpu.memory_space<vmem>>, vector<8x1xf32>
    tpu.vector_store %arg4[%c0_7, %c0_8], %14 {strides = array<i32>} : memref<8x1xf32, #tpu.memory_space<vmem>>, vector<8x1xf32>,
    return
  }
  func.func @transform_0(%arg0: i32) -> (i32, i32) {
    %c0_i32 = arith.constant 0 : i32
    %c0_i32_0 = arith.constant 0 : i32
    return %arg0, %c0_i32 : i32, i32
  }
  func.func @transform_1(%arg0: i32) -> (i32, i32) {
    %c0_i32 = arith.constant 0 : i32
    %c0_i32_0 = arith.constant 0 : i32
    %c0_i32_1 = arith.constant 0 : i32
    return %c0_i32, %c0_i32_0 : i32, i32
  }
  func.func @transform_2(%arg0: i32) -> (i32, i32) {
    %c0_i32 = arith.constant 0 : i32
    %c0_i32_0 = arith.constant 0 : i32
    %c0_i32_1 = arith.constant 0 : i32
    return %c0_i32, %c0_i32_0 : i32, i32
  }
  func.func @transform_3(%arg0: i32) -> (i32, i32) {
    %c0_i32 = arith.constant 0 : i32
    %c0_i32_0 = arith.constant 0 : i32
    return %arg0, %c0_i32 : i32, i32
  }
}

</mosaic_0001>

<bundles_post_ra>
// kernel: tpu_custom_call.1
= control target key start
LH: loop header
LB: loop body
LE: loop exit
PB: predicated region body
PF: predicated region fallthrough
CT: control target
= control target key end

     0   :  { %8 = vsyncpa [#allocation3], 0  ;;  %s809_s0 = inlined_call_operand.hbm [shape: f32[16,256], index: 0, kind: input, shape index: {}]   ;;  %s810_s1 = inlined_call_operand.hbm [shape: f32[256,128], index: 1, kind: input, shape index: {}]   ;;  %s811_s2 = inlined_call_operand.vmem [shape: f32[1,128], index: 2, kind: input, shape index: {}]   ;;  %s812_s3 = inlined_call_operand.vmem [shape: f32[16,1], index: 3, kind: output, shape index: {}]  }
   0x1   :  { %10 = vsyncpa [#allocation3 + $0x1], 0 }
   0x2   :  { %11 = vsyncpa [#allocation5], 0  ;;  %s660_s12 = smov 0   ;;  %s662_s13 = smov 0  }
   0x3   :  { %s664_s14 = smov 0   ;;  %s666_s15 = smov 0  }
   0x4 LB: > { %s679_s16 = sadd.s32 4294967295, %s634_s15   ;;  %p37_p0 = scmp.ne.s32.totalorder %s626_s13, %s622_s12  ;;  %s634_s15 = sphi %s666_s15, %s827_s15   ;;  %s630_s14 = sphi %s664_s14, %s826_s14   ;;  %s626_s13 = sphi %s662_s13, %s825_s13   ;;  %s622_s12 = sphi %s660_s12, %s824_s12  }
   0x5   : > { %p813_p1 = scmp.eq.s32.totalorder %s679_s16, 0  ;;  %p401_p2 = scmp.ge.s32.totalorder %s634_s15, 1 }
   0x6   : > { %p116_p3 = scmp.lt.s32.totalorder %s634_s15, 3  ;;  %s636_s19 = smov [#allocation4]  }
   0x7   : > { %p687_p4 = por %p813_p1, %p37_p0  ;;  %s128_s20 = sshll.u32 %s636_s19, 4  ;;  %s129_s20 = int_to_ptr.vmem [resolvable:$true] %s128_s20 }
   0x8   : > { %p691_p5 = pnand %p401_p2, %p116_p3  ;;  %s704_s22 = sadd.s32 1, %s634_s15  }
   0x9   : > { %s816_s17 = scalar_select %p687_p4, 1, 0 }
   0xa   : > { %s817_s18 = scalar_select %p691_p5, 1, 0 }
   0xb   : > { %p488_p6 = pneg %p691_p5  ;;  %s24_s23 = sadd.s32 1, %s630_s14 }
   0xc   : > { %s21_s24 = ssub.s32 %s634_s15, %s704_s22  ;;  %s538_s27 = scalar_lea.hbm %s810_s1, 4096 }
   0xd   : > { %p699_p7 = pnand %p488_p6, %p813_p1  ;;  %p539_p8 = scmp.ne.s32.totalorder %s810_s1, %s538_s27 }
   0xe   : > { %p545_p12 = scmp.lt.u32.totalorder %s538_s27, %s810_s1 }
   0xf   : > { %p540_p9 = pneg %p699_p7 }
  0x11   : > { %p541_p10 = pnand %p540_p9, %p539_p8 }
  0x13   : > { %p542_p11 = pneg %p541_p10 }
  0x15   : > { %p547_p13 = pnand %p545_p12, %p542_p11 }
  0x17   : > { %550 = shalt.err (!%p547_p13)
}
  0x18   : > { %s551_s5 = scalar_lea.vmem %s129_s20, 4096  ;;  %p559_p6 = scmp.lt.s32.totalorder %s129_s20, %s129_s20 }
  0x19   : > { %p552_p0 = scmp.ne.s32.totalorder %s129_s20, %s551_s5  ;;  %p560_p1 = scmp.lt.s32.totalorder %s551_s5, %s551_s5 }
  0x1b   : > { %p554_p2 = pnand %p552_p0, %p540_p9  ;;  %p561_p4 = por %p560_p1, %p559_p6 }
  0x1d   : > { %p555_p3 = pneg %p554_p2 }
  0x1f   : > { %p562_p5 = pnand %p561_p4, %p555_p3 }
  0x21   : > { %565 = shalt.err (!%p562_p5)
}
  0x22   : > { %s637_s6 = smov 128   ;;  %s638_s7 = smov 8  }
  0x23   : > { %491 = dma.hbm_to_vmem [thread:$0]  (!%p699_p7), %s810_s1, 4096, %s129_s20, [#allocation5], %s637_s6, %s637_s6, %s638_s7  }
  0x24   : > { %p22_p8 = scmp.eq.s32.totalorder %s21_s24, 0  ;;  %p31_p9 = scmp.ne.s32.totalorder %s630_s14, %s626_s13 }
  0x25   : > { %p32_p1 = scmp.eq.s32.totalorder %s634_s15, 0  ;;  %p497_p4 = scmp.lt.s32.totalorder %s634_s15, 2 }
  0x26   : > { %s730_s10 = scalar_select %p22_p8, %s630_s14, %s24_s23  }
  0x27   : > { %p33_p5 = por %p32_p1, %p31_p9  ;;  %s145_s11 = sand.u32 1, %s630_s14  }
  0x28   : > { %s404_s12 = sshll.u32 %s145_s11, 4  ;;  %s414_s19 = sshll.u32 %s634_s15, 8 }
  0x29   : > { %s737_s27 = scalar_lea.hbm %s809_s0, %s414_s19  ;;  %s149_s20 = scalar_lea.vmem [#allocation2], %s404_s12 }
  0x2a   : > { %s157_s21 = sshll.u32 %s149_s20, 4  ;;  %p741_p7 = pnand %p497_p4, %p33_p5  ;;  %s739_s21 = int_to_ptr.vmem [resolvable:$true] %s157_s21 }
  0x2b   : > { %s146_s15 = scalar_lea.sflag [#allocation3], %s145_s11  ;;  %s566_s24 = scalar_lea.hbm %s737_s27, 256 }
  0x2c   : > { %p567_p10 = scmp.ne.s32.totalorder %s737_s27, %s566_s24  ;;  %p568_p11 = pneg %p741_p7 }
  0x2d   : > { %s571_s30 = scalar_lea.hbm %s809_s0, 512  ;;  %p572_p0 = scmp.lt.u32.totalorder %s737_s27, %s809_s0 }
  0x2e   : > { %p569_p12 = pnand %p568_p11, %p567_p10  ;;  %p573_p2 = scmp.lt.u32.totalorder %s571_s30, %s566_s24 }
  0x2f   : > { %p575_p6 = scmp.lt.u32.totalorder %s566_s24, %s737_s27 }
  0x30   : > { %p570_p13 = pneg %p569_p12  ;;  %p574_p3 = por %p573_p2, %p572_p0 }
  0x32   : > { %p576_p8 = por %p575_p6, %p574_p3 }
  0x34   : > { %p577_p9 = pnand %p576_p8, %p570_p13 }
  0x36   : > { %580 = shalt.err (!%p577_p9)
}
  0x37   : > { %s581_s6 = scalar_lea.vmem %s739_s21, 256  ;;  %s639_s7 = smov [#allocation2]  }
  0x38   : > { %p582_p1 = scmp.ne.s32.totalorder %s739_s21, %s581_s6  ;;  %s586_s8 = sshll.u32 %s639_s7, 4  ;;  %s587_s8 = int_to_ptr.vmem [resolvable:$false] %s586_s8 }
  0x39   : > { %s588_s9 = scalar_lea.vmem %s587_s8, 512  ;;  %p589_p10 = scmp.lt.s32.totalorder %s739_s21, %s587_s8 }
  0x3a   : > { %p584_p4 = pnand %p582_p1, %p568_p11  ;;  %p590_p12 = scmp.lt.s32.totalorder %s588_s9, %s581_s6 }
  0x3c   : > { %p585_p5 = pneg %p584_p4  ;;  %p591_p0 = por %p590_p12, %p589_p10 }
  0x3e   : > { %p592_p2 = pnand %p591_p0, %p585_p5 }
  0x40   : > { %595 = shalt.err (!%p592_p2)
}
  0x41   : > { %495 = dma.hbm_to_vmem [thread:$0]  (!%p741_p7), %s737_s27, 256, %s739_s21, %s146_s15  }
  0x42   : > { %p820_p13 = scmp.ne.s32.totalorder %s817_s18, 0 }
  0x43   : > { %s168_s11 = sand.u32 (!%p820_p13), 1, %s626_s13   ;;  %p821_p11 = scmp.ne.s32.totalorder (!%p820_p13), %s816_s17, 0 }
  0x44   : > { %166 = sbr.rel (%p820_p13) target bundleno = 646 (0x286), region = 32  ;;  %s773_s12 = sshll.u32 (!%p820_p13), %s168_s11, 4 }
  0x45   : > { %s169_s19 = scalar_lea.sflag (!%p820_p13), [#allocation3], %s168_s11  ;;  %s172_s25 = scalar_lea.vmem (!%p820_p13), [#allocation2], %s773_s12 }
  0x4b   : > { %613 = dma.done.wait (%p821_p11), %s169_s19, 256  }
  0x4c   : > { %615 = vsyncadd (%p821_p11), %s169_s19, 4294967040  ;;  %p822_p3 = scmp.eq.s32.totalorder %s679_s16, 0 }
  0x4e   : > { %617 = dma.done.wait (%p822_p3), [#allocation5], 4096   ;;  %p823_p7 = pmov %p822_p3 }
  0x4f   : > { %v220_v0 = vld [vmem:[#allocation4 + $0x80] sm:$0xff]  ;;  %v221_v1 = vld [vmem:[#allocation4 + $0x88] sm:$0xff]  ;;  %v222_v5 = vld [vmem:[#allocation4 + $0x90] sm:$0xff]  ;;  %p198_p6 = scmp.lt.s32.totalorder %s679_s16, 1  ;;  %vm323_vm0 = vcmask 7168  }
  0x50   : > { %619 = vsyncadd (%p823_p7), [#allocation5], 4294963200  ;;  %v204_v2 = vld [vmem:[#allocation4] sm:$0xff]  ;;  %v450_v3 = vpack.c.bf16 %v221_v1, %v220_v0  ;;  %v205_v4 = vld [vmem:[#allocation4 + $0x8] sm:$0xff] }
  0x51   : > { %v223_v6 = vld [vmem:[#allocation4 + $0x98] sm:$0xff]  ;;  %v452_v7 = vpack.c.bf16 %v205_v4, %v204_v2  ;;  %v206_v9 = vld [vmem:[#allocation4 + $0x10] sm:$0xff]  ;;  %v224_v11 = vld [vmem:[#allocation4 + $0xa0] sm:$0xff]  ;;  %s829_s16 = smov (!%p198_p6, %s679_s16), 1 }
  0x52   : > { %v454_v8 = vpack.c.bf16 %v223_v6, %v222_v5  ;;  %v207_v10 = vld [vmem:[#allocation4 + $0x18] sm:$0xff]  ;;  %451 = vmatprep.subr.bf16.mxu0 %v450_v3  ;;  %v225_v12 = vld [vmem:[#allocation4 + $0xa8] sm:$0xff]  ;;  %v208_v15 = vld [vmem:[#allocation4 + $0x20] sm:$0xff]  ;;  %s410_s26 = sshll.u32 %s829_s16, 3 }
  0x53   : > { %453 = vmatpush3.bf16.msra.mxu0 %v452_v7  ;;  %v456_v13 = vpack.c.bf16 %v207_v10, %v206_v9  ;;  %v458_v14 = vpack.c.bf16 %v225_v12, %v224_v11  ;;  %v209_v16 = vld [vmem:[#allocation4 + $0x28] sm:$0xff]  ;;  %v226_v17 = vld [vmem:[#allocation4 + $0xb0] sm:$0xff]  ;;  %v227_v18 = vld [vmem:[#allocation4 + $0xb8] sm:$0xff]  ;;  %s201_s21 = scalar_lea.vmem %s812_s3, %s410_s26 }
  0x54   : > { %455 = vmatprep.subr.bf16.mxu0 %v454_v8  ;;  %v460_v19 = vpack.c.bf16 %v209_v16, %v208_v15  ;;  %v462_v20 = vpack.c.bf16 %v227_v18, %v226_v17  ;;  %v210_v21 = vld [vmem:[#allocation4 + $0x30] sm:$0xff]  ;;  %v211_v22 = vld [vmem:[#allocation4 + $0x38] sm:$0xff]  ;;  %v228_v23 = vld [vmem:[#allocation4 + $0xc0] sm:$0xff] }
  0x55   : > { %v229_v24 = vld [vmem:[#allocation4 + $0xc8] sm:$0xff]  ;;  %v464_v26 = vpack.c.bf16 %v211_v22, %v210_v21  ;;  %v212_v28 = vld [vmem:[#allocation4 + $0x40] sm:$0xff]  ;;  %v230_v30 = vld [vmem:[#allocation4 + $0xd0] sm:$0xff] }
  0x56   : > { %v203_v25 = vld [vmem:[%s172_s25 + $0x8] sm:$0xff]  ;;  %v466_v27 = vpack.c.bf16 %v229_v24, %v228_v23  ;;  %v214_v34 = vld [vmem:[#allocation4 + $0x50] sm:$0xff]  ;;  %v232_v36 = vld [vmem:[#allocation4 + $0xe0] sm:$0xff] }
  0x57   : > { %457 = vmatpush3.bf16.msra.mxu0 %v456_v13  ;;  %307 = vmatprep.mubr.f32.mxu0 %v203_v25  ;;  %v213_v29 = vld [vmem:[#allocation4 + $0x48] sm:$0xff]  ;;  %v231_v31 = vld [vmem:[#allocation4 + $0xd8] sm:$0xff]  ;;  %v216_v40 = vld [vmem:[#allocation4 + $0x60] sm:$0xff] }
  0x58   : > { %459 = vmatprep.subr.bf16.mxu0 %v458_v14  ;;  %v468_v32 = vpack.c.bf16 %v213_v29, %v212_v28  ;;  %v470_v33 = vpack.c.bf16 %v231_v31, %v230_v30  ;;  %v215_v35 = vld [vmem:[#allocation4 + $0x58] sm:$0xff]  ;;  %v233_v37 = vld [vmem:[#allocation4 + $0xe8] sm:$0xff]  ;;  %v234_v42 = vld [vmem:[#allocation4 + $0xf0] sm:$0xff] }
  0x59   : > { %v472_v38 = vpack.c.bf16 %v215_v35, %v214_v34  ;;  %v474_v39 = vpack.c.bf16 %v233_v37, %v232_v36  ;;  %v217_v41 = vld [vmem:[#allocation4 + $0x68] sm:$0xff]  ;;  %v235_v43 = vld [vmem:[#allocation4 + $0xf8] sm:$0xff]  ;;  %v218_v46 = vld [vmem:[#allocation4 + $0x70] sm:$0xff] }
  0x5a   : > { %v476_v44 = vpack.c.bf16 %v217_v41, %v216_v40  ;;  %v478_v45 = vpack.c.bf16 %v235_v43, %v234_v42  ;;  %v219_v47 = vld [vmem:[#allocation4 + $0x78] sm:$0xff]  ;;  %v202_v49 = vld [vmem:[%s172_s25] sm:$0xff] }
  0x5b   : > { %461 = vmatpush3.bf16.msra.mxu0 %v460_v19  ;;  %v480_v48 = vpack.c.bf16 %v219_v47, %v218_v46  ;;  %v411_v52 = vld [vmem:[%s811_s2] ss:$0 sm:$0xff] }
  0x5c   : > { %463 = vmatprep.subr.bf16.mxu0 %v462_v20 }
  0x5f   : > { %465 = vmatpush3.bf16.msra.mxu0 %v464_v26 }
  0x60   : > { %467 = vmatprep.subr.bf16.mxu0 %v466_v27 }
  0x63   : > { %469 = vmatpush3.bf16.msra.mxu0 %v468_v32 }
  0x64   : > { %471 = vmatprep.subr.bf16.mxu0 %v470_v33 }
  0x67   : > { %473 = vmatpush3.bf16.msra.mxu0 %v472_v38 }
  0x68   : > { %475 = vmatprep.subr.bf16.mxu0 %v474_v39 }
  0x6b   : > { %477 = vmatpush3.bf16.msra.mxu0 %v476_v44 }
  0x6c   : > { %479 = vmatprep.subr.bf16.mxu0 %v478_v45 }
  0x6f   : > { %481 = vmatpush3.bf16.msra.mxu0 %v480_v48 }
  0x72   : > { %308 = vmatmul.mubr.f32.vlgmr.msra.gmra.mrb[0].mxu0 %v202_v49 }
 0x145   : > { %v447_v50 = vpop.f32.mrb[0].mxu0 }
 0x146   : > { %v448_v51 = vpop.f32.mrb[1].mxu0 }
 0x147   : > { %v449_v53 = vadd.f32 %v448_v51, %v447_v50 }
 0x149   : > { %v310_v54 = vadd.f32 %v449_v53, %v411_v52 }
 0x14b   : > { %313 = vmax.xlane.f32.xlu0 %v310_v54 }
 0x1d8   : > { %v314_v55 = vpop.xlane.xlu0 %313 }
 0x1d9   : > { %v315_v56 = vsub.f32 %v310_v54, %v314_v55 }
 0x1db   : > { %v316_v57 = vmul.f32 1.442695, %v315_v56 }
 0x1dd   : > { %534 = vpow2.f32 %v316_v57 }
 0x1e7   : > { %v535_v58 = vpop.eup %534 }
 0x1e8   : > { %318 = vadd.xlane.f32.xlu0 %v535_v58 }
 0x275   : > { %v319_v59 = vpop.xlane.xlu0 %318 }
 0x276   : > { %536 = vlog2.f32 %v319_v59 }
 0x280   : > { %v537_v60 = vpop.eup %536 }
 0x281   : > { %v321_v61 = vmul.f32 0.6931472, %v537_v60 }
 0x283   : > { %v322_v62 = vadd.f32 %v321_v61, %v314_v55 }
 0x285   : > { %324 = vst.msk [vmem:[%s201_s21] sm:$0xff] %vm323_vm0, %v322_v62 }
 0x286 PF: > { %p14_p8 = scmp.ge.s32.totalorder %s704_s22, 4   ;;  %s824_s12 = smov %s626_s13 }
 0x287   : > { %s825_s13 = smov %s630_s14  ;;  %s826_s14 = smov %s730_s10 }
 0x288   : > { %s827_s15 = smov %s704_s22  ;;  %16 = sbr.rel (!%p14_p8) target bundleno = 4 (0x4), region = 76 }
 0x28f   :  { %344 = vsyncpa [#allocation3], 1 }
 0x290   :  { %346 = vsyncpa [#allocation3 + $0x1], 1 }
 0x291   :  { %347 = vsyncpa [#allocation5], 1 }

</bundles_post_ra>
